<compile_context>
chip_gen: v5e
topology: v5e:2x2
jax: 0.10.0
libtpu: 0.0.40
codegen_flags: <defaults>
</compile_context>

<pallas_src>
import jax
import jax.numpy as jnp
from jax.experimental import pallas as pl
from jax.experimental.pallas import tpu as pltpu


_LANE = 128
_VREG_ELEMS = 8 * _LANE  # one f32 vreg worth of elements
# ~4 MiB per block: big enough to sit at the measured ~86% HBM-roofline point
# on v6e/v7x and amortize the ~0.35 us per-grid-step overhead; 16 MiB live
# with double-buffered in+out, under the 32 MiB scoped VMEM requested below.
_DEFAULT_BLOCK_BYTES = 4 * 1024 * 1024
_SCOPED_VMEM_LIMIT_BYTES = 32 << 20  # safe on v5e/v6e (128 MiB) and v7x (64 MiB)
# Above this size, force >= 4 grid blocks so both v7x TensorCores engage and
# read/compute/write pipelining has something to overlap.
_MIN_SPLIT_BYTES = 1 << 20


def _h_sigmoid_kernel(x_ref, o_ref):
    x = x_ref[...]
    # relu6(x + 3) / 6.  Weakly-typed constants keep the arithmetic in the
    # input dtype (matches PyTorch half/bfloat16 behavior).
    o_ref[...] = (jnp.clip(x + 3.0, 0.0, 6.0) / 6.0).astype(o_ref.dtype)


def _sublane_pack(dtype) -> int:
    # Rows per native packing unit: 8 for 32-bit, 16 for 16-bit, 32 for 8-bit.
    itemsize = jnp.dtype(dtype).itemsize
    return max(8, 32 // max(itemsize, 1))


def _target_block_bytes() -> int:
    blk = _DEFAULT_BLOCK_BYTES
    try:  # trace-time hardware query; cap the block against this chip's VMEM.
        vmem = getattr(pltpu.get_tpu_info(), "vmem_capacity_bytes", None)
        if vmem:
            # in + out, double-buffered, plus headroom -> <= vmem/16 per block.
            blk = min(blk, max(512 * 1024, vmem // 16))
    except Exception:
        pass
    return blk


def _pick_lane_width(total: int, pack: int):
    """Widest lane width (multiple of 128) dividing `total`, preferring widths
    that leave at least `pack` rows.  None if `total` is not a multiple of 128."""
    fallback = None
    for w in (2048, 1024, 512, 256, _LANE):
        if total % w == 0:
            if fallback is None:
                fallback = w
            if total // w >= pack:
                return w
    return fallback


def _compiler_params():
    return pltpu.CompilerParams(
        dimension_semantics=("parallel",),          # shards across TCs on v7x
        vmem_limit_bytes=_SCOPED_VMEM_LIMIT_BYTES,  # explicit on all gens
    )


@jax.jit
def h_sigmoid(x: jax.Array) -> jax.Array:
    """Elementwise hard-sigmoid, matching torch: relu6(x + 3) / 6."""
    orig_shape = x.shape
    dtype = x.dtype
    total = x.size
    if total == 0:
        return x

    itemsize = jnp.dtype(dtype).itemsize
    pack = _sublane_pack(dtype)
    block_bytes = _target_block_bytes()
    total_bytes = total * itemsize

    x_flat = jnp.ravel(x)  # bitcast for a contiguous array
    lane_w = _pick_lane_width(total, pack)

    if lane_w is not None:
        # ---- lane-aligned 2-D slab path (all typical conv activations) ----
        rows = total // lane_w
        tile_r = max(pack, (block_bytes // (lane_w * itemsize)) // pack * pack)
        if total_bytes > _MIN_SPLIT_BYTES and rows >= 4 * pack:
            # Guarantee >= 4 blocks on sizeable tensors (megacore + pipelining).
            tile_r = min(tile_r, max(pack, (pl.cdiv(rows, 4) // pack) * pack))
        tile_r = min(tile_r, rows)        # full-extent block is always legal
        grid = (pl.cdiv(rows, tile_r),)   # edge block (if any) masked by Pallas

        out2d = pl.pallas_call(
            _h_sigmoid_kernel,
            out_shape=jax.ShapeDtypeStruct((rows, lane_w), dtype),
            grid_spec=pltpu.PrefetchScalarGridSpec(
                num_scalar_prefetch=0,
                grid=grid,
                in_specs=[pl.BlockSpec((tile_r, lane_w), lambda i: (i, 0))],
                out_specs=pl.BlockSpec((tile_r, lane_w), lambda i: (i, 0)),
            ),
            compiler_params=_compiler_params(),
        )(x_flat.reshape(rows, lane_w))
        return out2d.reshape(orig_shape)

    # ---- ragged path: flat 1-D, no pad / no trailing slice ----
    blk = max(_VREG_ELEMS, (block_bytes // itemsize) // _VREG_ELEMS * _VREG_ELEMS)
    if total_bytes > _MIN_SPLIT_BYTES:
        blk = min(blk, max(_VREG_ELEMS,
                           (pl.cdiv(total, 4) // _VREG_ELEMS) * _VREG_ELEMS))
    if blk >= total:
        blk = total                      # single full-array block (always legal)
    grid = (pl.cdiv(total, blk),)        # final partial block masked by Pallas

    out1d = pl.pallas_call(
        _h_sigmoid_kernel,
        out_shape=jax.ShapeDtypeStruct((total,), dtype),
        grid_spec=pltpu.PrefetchScalarGridSpec(
            num_scalar_prefetch=0,
            grid=grid,
            in_specs=[pl.BlockSpec((blk,), lambda i: (i,))],
            out_specs=pl.BlockSpec((blk,), lambda i: (i,)),
        ),
        compiler_params=_compiler_params(),
    )(x_flat)
    return out1d.reshape(orig_shape)


def _ref(x):
    return jnp.clip(x + 3.0, 0.0, 6.0) / 6.0


if __name__ == "__main__":
    key = jax.random.PRNGKey(0)

    # Main check: NCHW f32 input (lane-aligned 2-D fast path).
    x = jax.random.normal(key, (2, 4, 16, 16), dtype=jnp.float32) * 4.0
    y = jax.block_until_ready(h_sigmoid(x))
    assert y.shape == x.shape and y.dtype == x.dtype
    assert jnp.max(jnp.abs(y - _ref(x))) < 1e-6

    # bf16 path (16-row sublane packing).
    xb = x.astype(jnp.bfloat16)
    yb = jax.block_until_ready(h_sigmoid(xb))
    assert yb.shape == xb.shape and yb.dtype == xb.dtype
    assert jnp.max(jnp.abs(yb.astype(jnp.float32)
                           - _ref(xb.astype(jnp.float32)))) < 2e-2

    # Ragged-size path (flat 1-D, masked edge block; no pad / no slice).
    xr = jax.random.normal(jax.random.PRNGKey(1), (2, 3, 7, 5),
                           dtype=jnp.float32) * 4.0
    yr = jax.block_until_ready(h_sigmoid(xr))
    assert yr.shape == xr.shape and yr.dtype == xr.dtype
    assert jnp.max(jnp.abs(yr - _ref(xr))) < 1e-6

    print("KERNEL_OK")
</pallas_src>

<mosaic_0001>
module attributes {stable_mosaic.version = 11 : i64} {
  func.func @_h_sigmoid_kernel(%arg0: i32, %arg1: memref<8x256xf32, #tpu.memory_space<vmem>>, %arg2: memref<8x256xf32, #tpu.memory_space<vmem>>) attributes {dimension_semantics = [#tpu.dimension_semantics<parallel>], iteration_bounds = array<i64: 1>, scalar_prefetch = 0 : i64, scratch_operands = 0 : i64, tpu.core_type = #tpu.core_type<tc>, window_params = [{transform_indices = @transform_0, window_bounds = array<i64: 8, 256>}, {transform_indices = @transform_1, window_bounds = array<i64: 8, 256>}]} {
    %c0 = arith.constant 0 : index
    %c0_0 = arith.constant 0 : index
    %0 = vector.load %arg1[%c0, %c0_0] : memref<8x256xf32, #tpu.memory_space<vmem>>, vector<8x256xf32>
    %cst = arith.constant 3.000000e+00 : f32
    %1 = vector.broadcast %cst : f32 to vector<8x256xf32>
    %2 = arith.addf %0, %1 : vector<8x256xf32>
    %cst_1 = arith.constant 0.000000e+00 : f32
    %cst_2 = arith.constant 6.000000e+00 : f32
    %3 = vector.broadcast %cst_1 : f32 to vector<8x256xf32>
    %4 = arith.maximumf %3, %2 : vector<8x256xf32>
    %5 = vector.broadcast %cst_2 : f32 to vector<8x256xf32>
    %6 = arith.minimumf %5, %4 : vector<8x256xf32>
    %cst_3 = arith.constant 6.000000e+00 : f32
    %7 = vector.broadcast %cst_3 : f32 to vector<8x256xf32>
    %8 = arith.divf %6, %7 : vector<8x256xf32>
    %c0_4 = arith.constant 0 : index
    %c0_5 = arith.constant 0 : index
    %9 = vector.load %arg2[%c0_4, %c0_5] : memref<8x256xf32, #tpu.memory_space<vmem>>, vector<8x256xf32>
    tpu.vector_store %arg2[%c0_4, %c0_5], %8 {strides = array<i32>} : memref<8x256xf32, #tpu.memory_space<vmem>>, vector<8x256xf32>,
    return
  }
  func.func @transform_0(%arg0: i32) -> (i32, i32) {
    %c0_i32 = arith.constant 0 : i32
    %c0_i32_0 = arith.constant 0 : i32
    return %arg0, %c0_i32 : i32, i32
  }
  func.func @transform_1(%arg0: i32) -> (i32, i32) {
    %c0_i32 = arith.constant 0 : i32
    %c0_i32_0 = arith.constant 0 : i32
    return %arg0, %c0_i32 : i32, i32
  }
}

</mosaic_0001>

<bundles_post_ra>
// kernel: h_sigmoid.1
= control target key start
LH: loop header
LB: loop body
LE: loop exit
PB: predicated region body
PF: predicated region fallthrough
CT: control target
= control target key end

     0   :  { %v34_v0 = vmov 6.0   ;;  %s57_s0 = inlined_call_operand.vmem [shape: f32[8,256], index: 0, kind: input, shape index: {}]   ;;  %s58_s1 = inlined_call_operand.vmem [shape: f32[8,256], index: 1, kind: output, shape index: {}]  }
   0x1   :  { %32 = vrcp.f32 %v34_v0  ;;  %v8_v1 = vld [vmem:[%s57_s0] sm:$0xff]  ;;  %v9_v2 = vld [vmem:[%s57_s0 + $0x8] sm:$0xff] }
   0x2   :  { %v10_v3 = vadd.f32 3.0, %v8_v1  ;;  %v11_v4 = vadd.f32 3.0, %v9_v2 }
   0x4   :  { %v12_v7 = vmax.f32 %v10_v3, 0.0  ;;  %v13_v8 = vmax.f32 %v11_v4, 0.0 }
   0x6   :  { %v14_v11 = vmin.f32 %v12_v7, 6.0  ;;  %v15_v12 = vmin.f32 %v13_v8, 6.0 }
   0x7   :  { %v33_v5 = vpop.eup %32 }
   0x8   :  { %v17_v6 = vmul.f32 6.0, %v33_v5  ;;  %vm21_vm0 = vweird.f32 %v33_v5 }
   0xa   :  { %v18_v9 = vsub.f32 1.0, %v17_v6 }
   0xc   :  { %v19_v10 = vmul.f32 %v33_v5, %v18_v9 }
   0xe   :  { %v20_v13 = vadd.f32 %v33_v5, %v19_v10 }
  0x10   :  { %v22_v14 = vsel %vm21_vm0, %v33_v5, %v20_v13 }
  0x11   :  { %v23_v15 = vmul.f32 %v22_v14, %v14_v11  ;;  %v24_v16 = vmul.f32 %v22_v14, %v15_v12 }
  0x13   :  { %25 = vst [vmem:[%s58_s1] sm:$0xff] %v23_v15 }
  0x14   :  { %26 = vst [vmem:[%s58_s1 + $0x8] sm:$0xff] %v24_v16 }

</bundles_post_ra>
